<compile_context>
chip_gen: v7x
topology: tpu7x:2x2x1
jax: 0.10.0
libtpu: 0.0.40
codegen_flags: <defaults>
</compile_context>

<pallas_src>
import functools

import jax
import jax.numpy as jnp
from jax.experimental import pallas as pl
from jax.experimental.pallas import tpu as pltpu


_HEADROOM = 4 << 20      # compiler scratch / pipeline bookkeeping allowance
_COMPUTE_ITEMSIZE = 4    # kernel computes in f32


def _round_up(v, m):
    return ((v + m - 1) // m) * m


def _limit_range_kernel(x_ref, o_ref, *, scale, offset):
    # sigmoid(x/100)*scale + offset == 0.5*scale*tanh(x*0.005) + (0.5*scale+offset)
    # -> single EUP transcendental per element; VALU work is trivial filler.
    x = x_ref[...].astype(jnp.float32)
    y = jnp.tanh(x * 0.005) * (0.5 * scale) + (0.5 * scale + offset)
    o_ref[...] = y.astype(o_ref.dtype)


def _vmem_budget_bytes():
    # Per-generation scoped-VMEM budget: 75% of physical capacity
    # (64 MiB/TC on v7x -> 48 MiB; 128 MiB on v5e/v6e -> 96 MiB).
    try:
        cap = int(pltpu.get_tpu_info().vmem_capacity_bytes)
    except Exception:
        cap = 64 << 20  # conservative fallback: v7x per-TC VMEM
    return int(min((cap * 3) // 4, 112 << 20))


def _pick_lane(n, q):
    """Widest lane width dividing n; prefer row counts that are a multiple of
    the dtype sublane quantum q. None if n is not a multiple of 128."""
    for cand in (1024, 512, 256, 128):
        if n % cand == 0 and (n // cand) % q == 0:
            return cand
    for cand in (1024, 512, 256, 128):
        if n % cand == 0:
            return cand
    return None


def _tiled_call(kernel, x2d, out_dtype, q, budget):
    rows, lane = x2d.shape
    itemsize = jnp.dtype(x2d.dtype).itemsize
    # Per-element VMEM cost: double-buffered in + out blocks plus the in-kernel
    # f32 temporaries (upcast input + f32 result before the final downcast).
    per_elem = 4 * itemsize + 2 * _COMPUTE_ITEMSIZE
    # ~8 MiB blocks on 64 MiB-VMEM parts, ~16 MiB on 128 MiB parts: keeps the
    # ~0.35 us/step fixed overhead at a few percent of each step's DMA time.
    target_block_bytes = (8 << 20) if budget <= (48 << 20) else (16 << 20)
    cap_elems = min(max(lane * q, (budget - _HEADROOM) // per_elem),
                    max(lane * q, target_block_bytes // itemsize))
    max_rows = max(q, ((cap_elems // lane) // q) * q)

    tile_rows = rows if max_rows >= rows else max_rows
    # Megacore (v7x, 2 TCs): guarantee at least two roughly balanced grid steps
    # whenever the row count can be split on the sublane quantum.
    if rows >= 2 * q:
        tile_rows = min(tile_rows, _round_up(pl.cdiv(rows, 2), q))
    grid_steps = pl.cdiv(rows, tile_rows)
    # Prefer an even step count so neither TensorCore idles on a tail step.
    if grid_steps > 2 and grid_steps % 2 == 1:
        cand = min(tile_rows, _round_up(pl.cdiv(rows, grid_steps + 1), q))
        if cand >= q and pl.cdiv(rows, cand) % 2 == 0:
            tile_rows = cand
            grid_steps = pl.cdiv(rows, tile_rows)

    usage = tile_rows * lane * per_elem + _HEADROOM
    vmem_limit = int(min(max(usage, 32 << 20), budget))

    return pl.pallas_call(
        kernel,
        out_shape=jax.ShapeDtypeStruct((rows, lane), out_dtype),
        grid_spec=pltpu.PrefetchScalarGridSpec(
            num_scalar_prefetch=0,
            grid=(grid_steps,),
            in_specs=[pl.BlockSpec((tile_rows, lane), lambda i: (i, 0))],
            out_specs=pl.BlockSpec((tile_rows, lane), lambda i: (i, 0)),
        ),
        compiler_params=pltpu.CompilerParams(
            dimension_semantics=("parallel",),
            vmem_limit_bytes=vmem_limit,
        ),
    )(x2d)


def _limit_range_impl(x, target_min, target_max):
    orig_shape = x.shape
    orig_dtype = x.dtype
    n = int(x.size)
    if n == 0:
        return x

    scale = float(target_max) - float(target_min)
    offset = float(target_min)
    kernel = functools.partial(_limit_range_kernel, scale=scale, offset=offset)

    itemsize = jnp.dtype(orig_dtype).itemsize
    q = max(8, 32 // itemsize)          # dtype-aware sublane quantum
    budget = _vmem_budget_bytes()

    x_flat = jnp.ravel(x)
    lane = _pick_lane(n, q)

    if lane is not None:
        # Fast path: pure reshape, no padding / slicing HBM passes.
        out2d = _tiled_call(kernel, x_flat.reshape(n // lane, lane),
                            orig_dtype, q, budget)
        return out2d.reshape(orig_shape)

    # ---- x.size not a multiple of 128 ------------------------------------
    small_bytes = n * (2 * itemsize + 2 * _COMPUTE_ITEMSIZE) + _HEADROOM
    if small_bytes <= budget and n * itemsize <= (4 << 20):
        # Single unblocked kernel over the flat array: no pad, no slice.
        vmem_limit = int(min(max(small_bytes, 32 << 20), budget))
        out_flat = pl.pallas_call(
            kernel,
            out_shape=jax.ShapeDtypeStruct((n,), orig_dtype),
            in_specs=[pl.BlockSpec(memory_space=pltpu.MemorySpace.VMEM)],
            out_specs=pl.BlockSpec(memory_space=pltpu.MemorySpace.VMEM),
            compiler_params=pltpu.CompilerParams(vmem_limit_bytes=vmem_limit),
        )(x_flat)
        return out_flat.reshape(orig_shape)

    # Rare: very large tensor whose size is not a multiple of 128. Pad to the
    # next multiple of 512 and slice (costs ~2 extra HBM passes on this path).
    lane = 512
    n_pad = _round_up(n, lane)
    x2d = jnp.pad(x_flat, (0, n_pad - n)).reshape(n_pad // lane, lane)
    out2d = _tiled_call(kernel, x2d, orig_dtype, q, budget)
    return out2d.reshape(-1)[:n].reshape(orig_shape)


# target_min/target_max are static Python scalars (matches the nn.Module ctor).
_limit_range_jit = jax.jit(_limit_range_impl, static_argnums=(1, 2))


def limit_range_layer(x, target_min=0, target_max=255):
    """sigmoid(x / 100) * (target_max - target_min) + target_min."""
    return _limit_range_jit(x, target_min, target_max)


if __name__ == "__main__":
    key = jax.random.PRNGKey(0)
    k0, k1, k2, k3 = jax.random.split(key, 4)

    def ref_fn(x, tmin, tmax):
        xf = x.astype(jnp.float32)
        return jax.nn.sigmoid(xf / 100.0) * (tmax - tmin) + tmin

    # 1) NCHW image-style tensor (fast path: no padding, lane-dense slab).
    x = jax.random.normal(k0, (2, 4, 16, 16), dtype=jnp.float32) * 300.0
    out = jax.block_until_ready(limit_range_layer(x, 0, 255))
    assert out.shape == x.shape and out.dtype == x.dtype
    assert jnp.allclose(out, ref_fn(x, 0.0, 255.0), atol=1e-3, rtol=1e-5)

    # 2) Odd-sized tensor -> single unblocked kernel (no pad/slice passes).
    x2 = jax.random.normal(k1, (3, 5, 7), dtype=jnp.float32) * 300.0
    out2 = jax.block_until_ready(limit_range_layer(x2, -1, 1))
    assert out2.shape == x2.shape
    assert jnp.allclose(out2, ref_fn(x2, -1.0, 1.0), atol=1e-3, rtol=1e-5)

    # 3) Larger tensor -> multi-step "parallel" grid (megacore-splittable).
    x3 = jax.random.normal(k2, (2, 8, 32, 128), dtype=jnp.float32) * 300.0
    out3 = jax.block_until_ready(limit_range_layer(x3, 0, 255))
    assert out3.shape == x3.shape
    assert jnp.allclose(out3, ref_fn(x3, 0.0, 255.0), atol=1e-3, rtol=1e-5)

    # 4) bf16 input exercises the dtype-aware (16,128) sublane-quantum path.
    x4 = (jax.random.normal(k3, (4, 8, 128), dtype=jnp.float32) * 300.0).astype(jnp.bfloat16)
    out4 = jax.block_until_ready(limit_range_layer(x4, 0, 255))
    assert out4.shape == x4.shape and out4.dtype == jnp.bfloat16
    assert jnp.allclose(out4.astype(jnp.float32), ref_fn(x4, 0.0, 255.0),
                        atol=4.0, rtol=0.05)

    print("KERNEL_OK")
</pallas_src>

<mosaic_0001>
module attributes {stable_mosaic.version = 11 : i64} {
  func.func @_limit_range_kernel(%arg0: i32, %arg1: memref<8x256xf32, #tpu.memory_space<vmem>>, %arg2: memref<8x256xf32, #tpu.memory_space<vmem>>) attributes {dimension_semantics = [#tpu.dimension_semantics<parallel>], iteration_bounds = array<i64: 1>, scalar_prefetch = 0 : i64, scratch_operands = 0 : i64, tpu.core_type = #tpu.core_type<tc>, window_params = [{transform_indices = @transform_0, window_bounds = array<i64: 8, 256>}, {transform_indices = @transform_1, window_bounds = array<i64: 8, 256>}]} {
    %c0 = arith.constant 0 : index
    %c0_0 = arith.constant 0 : index
    %0 = vector.load %arg1[%c0, %c0_0] : memref<8x256xf32, #tpu.memory_space<vmem>>, vector<8x256xf32>
    %cst = arith.constant 5.000000e-03 : f32
    %1 = vector.broadcast %cst : f32 to vector<8x256xf32>
    %2 = arith.mulf %0, %1 : vector<8x256xf32>
    %3 = math.tanh %2 : vector<8x256xf32>
    %cst_1 = arith.constant 1.275000e+02 : f32
    %4 = vector.broadcast %cst_1 : f32 to vector<8x256xf32>
    %5 = arith.mulf %3, %4 : vector<8x256xf32>
    %cst_2 = arith.constant 1.275000e+02 : f32
    %6 = vector.broadcast %cst_2 : f32 to vector<8x256xf32>
    %7 = arith.addf %5, %6 : vector<8x256xf32>
    %c0_3 = arith.constant 0 : index
    %c0_4 = arith.constant 0 : index
    %8 = vector.load %arg2[%c0_3, %c0_4] : memref<8x256xf32, #tpu.memory_space<vmem>>, vector<8x256xf32>
    tpu.vector_store %arg2[%c0_3, %c0_4], %7 {strides = array<i32>} : memref<8x256xf32, #tpu.memory_space<vmem>>, vector<8x256xf32>,
    return
  }
  func.func @transform_0(%arg0: i32) -> (i32, i32) {
    %c0_i32 = arith.constant 0 : i32
    %c0_i32_0 = arith.constant 0 : i32
    return %arg0, %c0_i32 : i32, i32
  }
  func.func @transform_1(%arg0: i32) -> (i32, i32) {
    %c0_i32 = arith.constant 0 : i32
    %c0_i32_0 = arith.constant 0 : i32
    return %arg0, %c0_i32 : i32, i32
  }
}

</mosaic_0001>

<bundles_post_ra>
// kernel: _limit_range_impl.1
= control target key start
LH: loop header
LB: loop body
LE: loop exit
PB: predicated region body
PF: predicated region fallthrough
CT: control target
= control target key end

     0   :  { %s50_s0 = inlined_call_operand.vmem [shape: f32[8,256], index: 0, kind: input, shape index: {}]   ;;  %s51_s1 = inlined_call_operand.vmem [shape: f32[8,256], index: 1, kind: output, shape index: {}]  }
   0x1   :  { %v8_v0 = vld [vmem:[%s50_s0] sm:$0xff]  ;;  %v9_v1 = vld [vmem:[%s50_s0 + $0x8] sm:$0xff] }
   0x2   :  { %v10_v2 = vmul.f32 0.005, %v8_v0  ;;  %v11_v3 = vmul.f32 0.005, %v9_v1 }
   0x4   :  { %24 = vtanh.f32 %v10_v2 }
   0x5   :  { %26 = vtanh.f32 %v11_v3 }
   0xe   :  { %v25_v4 = vpop.eup %24 }
   0xf   :  { %v27_v5 = vpop.eup %26  ;;  %v14_v6 = vmul.f32 127.5, %v25_v4 }
  0x10   :  { %v15_v7 = vmul.f32 127.5, %v27_v5 }
  0x11   :  { %v16_v8 = vadd.f32 127.5, %v14_v6 }
  0x12   :  { %v17_v9 = vadd.f32 127.5, %v15_v7 }
  0x13   :  { %18 = vst [vmem:[%s51_s1] sm:$0xff] %v16_v8 }
  0x14   :  { %19 = vst [vmem:[%s51_s1 + $0x8] sm:$0xff] %v17_v9 }

</bundles_post_ra>
